<compile_context>
chip_gen: v5e
topology: v5e:2x2
jax: 0.10.0
libtpu: 0.0.40
codegen_flags: <defaults>
</compile_context>

<pallas_src>
import functools
import math

import jax
import jax.numpy as jnp
from jax.experimental import pallas as pl
from jax.experimental.pallas import tpu as pltpu


# ---------------------------------------------------------------------------
# Kernels
# ---------------------------------------------------------------------------

def _qkv_projection_kernel(x_ref, w_ref, b_ref, q_ref, kt_ref, v_ref, *, scale):
    """Grid = (B,).  x: (1,S,d), w: (3,d,H), b: (3,1,H).

    Emits Q pre-scaled by 1/sqrt(H), K transposed to (H,S) (one f32 transpose
    per batch element, amortised over every q-block of the attention pass),
    and V — all cast to the outputs' compute dtype (bf16 by default).
    """
    x = x_ref[0]                                            # (S, d), native dtype
    q = jnp.dot(x, w_ref[0], preferred_element_type=jnp.float32) + b_ref[0]
    k = jnp.dot(x, w_ref[1], preferred_element_type=jnp.float32) + b_ref[1]
    v = jnp.dot(x, w_ref[2], preferred_element_type=jnp.float32) + b_ref[2]
    q_ref[0] = (q * scale).astype(q_ref.dtype)              # fold 1/sqrt(H) into Q
    kt_ref[0] = k.T.astype(kt_ref.dtype)                    # (H, S)
    v_ref[0] = v.astype(v_ref.dtype)


def _attention_kernel(q_ref, kt_ref, v_ref, out_ref, *attn_refs):
    """Grid = (B, S//q_block) (or (B,) when S fits one block).

    No carried state across grid steps, so every grid axis is parallel-safe.
    """
    q = q_ref[0]                                            # (tq, H), pre-scaled
    kt = kt_ref[0]                                          # (H, S)
    v = v_ref[0]                                            # (S, H)

    # scores = (Q/sqrt(H)) @ K^T  — bf16 operands, f32 accumulation.
    scores = jnp.dot(q, kt, preferred_element_type=jnp.float32)   # (tq, S)

    # Numerically-stable row softmax. Denominator uses the EUP approximate
    # reciprocal: rows sum to 1 only to ~1e-3 relative (fine for this module).
    m = jnp.max(scores, axis=-1, keepdims=True)
    e = jnp.exp(scores - m)
    denom = jnp.sum(e, axis=-1, keepdims=True)
    attn = e * pl.reciprocal(denom, approx=True)            # (tq, S) f32

    out = jnp.dot(attn.astype(v.dtype), v,
                  preferred_element_type=jnp.float32)       # (tq, H) f32

    out_ref[0] = out.astype(out_ref.dtype)
    if attn_refs:                                           # optional attn output
        attn_refs[0][0] = attn.astype(attn_refs[0].dtype)


# ---------------------------------------------------------------------------
# Wrapper
# ---------------------------------------------------------------------------

def _itemsize(dt):
    return jnp.dtype(dt).itemsize


def _pick_q_block(S, target=128):
    """Largest q-block <= target that divides S (multiple of 8), else whole S."""
    if S <= target:
        return S
    for cand in range(target, 7, -8):
        if S % cand == 0:
            return cand
    return S


def _vmem_limit_bytes(per_step_bytes):
    """Request the real working set (+50% compiler headroom), capped at 80% of
    this chip's physical VMEM (v7x has only 64 MiB per TensorCore)."""
    try:
        cap = pltpu.get_tpu_info().vmem_capacity_bytes
    except Exception:
        cap = 64 * 1024 * 1024          # conservative fallback (v7x per-core)
    want = max(int(per_step_bytes * 1.5), 2 * 1024 * 1024)
    return int(min(want, int(cap * 0.8)))


def attention_head(x, wq, bq, wk, bk, wv, bv, *, q_block=None,
                   compute_dtype=jnp.bfloat16, return_attn=True,
                   attn_dtype=jnp.float32, out_dtype=None):
    """Single-head self-attention matching PyTorch AttentionHead.forward.

    x: (B, S, d_model); wq/wk/wv: (d_model, head_size); b*: (head_size,).
    Returns out (B,S,head_size) and, if return_attn, attn (B,S,S) (the PyTorch
    module's self.attn_weights).
    """
    B, S, d_model = x.shape
    H = wq.shape[1]
    out_dtype = x.dtype if out_dtype is None else out_dtype
    if q_block is None:
        q_block = _pick_q_block(S)
    assert S % q_block == 0, "q_block must divide S"
    num_q = S // q_block
    scale = 1.0 / math.sqrt(H)

    w = jnp.stack([wq, wk, wv], axis=0)                    # (3, d, H)
    b = jnp.stack([bq, bk, bv], axis=0).reshape(3, 1, H)   # (3, 1, H)
    cb = _itemsize(compute_dtype)

    # ---- Pass 1: fused QKV projection (once per batch element) -------------
    proj_bytes = 2 * (S * d_model * _itemsize(x.dtype)
                      + 3 * d_model * H * _itemsize(w.dtype)
                      + 3 * 8 * 128 * _itemsize(b.dtype)        # padded bias tile
                      + (2 * S * H + H * S) * cb)               # q, v, kt outputs
    proj_bytes += 6 * S * H * 4                                 # f32 intermediates

    q, kt, v = pl.pallas_call(
        functools.partial(_qkv_projection_kernel, scale=scale),
        out_shape=(
            jax.ShapeDtypeStruct((B, S, H), compute_dtype),     # Q (pre-scaled)
            jax.ShapeDtypeStruct((B, H, S), compute_dtype),     # K^T
            jax.ShapeDtypeStruct((B, S, H), compute_dtype),     # V
        ),
        grid_spec=pltpu.PrefetchScalarGridSpec(
            num_scalar_prefetch=0,
            grid=(B,),
            in_specs=[
                pl.BlockSpec((1, S, d_model), lambda b_: (b_, 0, 0)),
                pl.BlockSpec((3, d_model, H), lambda b_: (0, 0, 0)),
                pl.BlockSpec((3, 1, H), lambda b_: (0, 0, 0)),
            ],
            out_specs=[
                pl.BlockSpec((1, S, H), lambda b_: (b_, 0, 0)),
                pl.BlockSpec((1, H, S), lambda b_: (b_, 0, 0)),
                pl.BlockSpec((1, S, H), lambda b_: (b_, 0, 0)),
            ],
        ),
        compiler_params=pltpu.CompilerParams(
            dimension_semantics=("parallel",),
            vmem_limit_bytes=_vmem_limit_bytes(proj_bytes),
        ),
    )(x, w, b)

    # ---- Pass 2: attention over q-blocks (all grid axes parallel) ----------
    if num_q > 1:
        grid = (B, num_q)
        q_map = lambda b_, qi: (b_, qi, 0)
        bc_map = lambda b_, qi: (b_, 0, 0)
        dims = ("parallel", "parallel")
    else:
        grid = (B,)                        # collapse the degenerate q axis
        q_map = lambda b_: (b_, 0, 0)
        bc_map = lambda b_: (b_, 0, 0)
        dims = ("parallel",)

    out_shapes = [jax.ShapeDtypeStruct((B, S, H), out_dtype)]
    out_specs = [pl.BlockSpec((1, q_block, H), q_map)]
    if return_attn:
        out_shapes.append(jax.ShapeDtypeStruct((B, S, S), attn_dtype))
        out_specs.append(pl.BlockSpec((1, q_block, S), q_map))

    attn_bytes = 2 * (q_block * H * cb + H * S * cb + S * H * cb
                      + q_block * H * _itemsize(out_dtype))
    if return_attn:
        attn_bytes += 2 * q_block * S * _itemsize(attn_dtype)
    attn_bytes += 4 * q_block * S * 4                           # f32 softmax temps

    results = pl.pallas_call(
        _attention_kernel,
        out_shape=tuple(out_shapes),
        grid_spec=pltpu.PrefetchScalarGridSpec(
            num_scalar_prefetch=0,
            grid=grid,
            in_specs=[
                pl.BlockSpec((1, q_block, H), q_map),
                pl.BlockSpec((1, H, S), bc_map),
                pl.BlockSpec((1, S, H), bc_map),
            ],
            out_specs=out_specs,
        ),
        compiler_params=pltpu.CompilerParams(
            dimension_semantics=dims,
            vmem_limit_bytes=_vmem_limit_bytes(attn_bytes),
        ),
    )(q, kt, v)

    if return_attn:
        out, attn = results
        return out, attn
    (out,) = results
    return out


# ---------------------------------------------------------------------------
# Reference / test
# ---------------------------------------------------------------------------

def _init_linear(key, in_features, out_features):
    # Mimics nn.Linear init uniform(-1/sqrt(in), 1/sqrt(in)); stored transposed.
    kw, kb = jax.random.split(key)
    bound = 1.0 / math.sqrt(in_features)
    w = jax.random.uniform(kw, (in_features, out_features), jnp.float32,
                           minval=-bound, maxval=bound)
    b = jax.random.uniform(kb, (out_features,), jnp.float32,
                           minval=-bound, maxval=bound)
    return w, b


def _reference(x, wq, bq, wk, bk, wv, bv):
    head_size = wq.shape[1]
    q = x @ wq + bq
    k = x @ wk + bk
    v = x @ wv + bv
    scores = (q @ jnp.swapaxes(k, -2, -1)) / math.sqrt(head_size)
    attn = jax.nn.softmax(scores, axis=-1)
    return attn @ v, attn


if __name__ == "__main__":
    key = jax.random.PRNGKey(0)
    kx, kq, kk, kv, kx2 = jax.random.split(key, 5)

    # Shapes implied by the module: batch=2, seq=8, d_model=32, head_size=16.
    B, S, d_model, head_size = 2, 8, 32, 16
    x = jax.random.normal(kx, (B, S, d_model), jnp.float32)
    wq, bq = _init_linear(kq, d_model, head_size)
    wk, bk = _init_linear(kk, d_model, head_size)
    wv, bv = _init_linear(kv, d_model, head_size)
    out_ref, attn_ref = _reference(x, wq, bq, wk, bk, wv, bv)

    # --- Case 1: f32 compute path, attn returned in f32 (tight check). ------
    out, attn = attention_head(x, wq, bq, wk, bk, wv, bv,
                               compute_dtype=jnp.float32)
    jax.block_until_ready((out, attn))
    assert jnp.allclose(out, out_ref, atol=2e-3, rtol=2e-3)
    assert jnp.allclose(attn, attn_ref, atol=2e-3, rtol=2e-3)

    # --- Case 2: default bf16-MXU path, attn output dropped entirely. -------
    out_b = attention_head(x, wq, bq, wk, bk, wv, bv, return_attn=False)
    jax.block_until_ready(out_b)
    assert jnp.allclose(out_b, out_ref, atol=2e-2, rtol=2e-2)

    # --- Case 3: longer sequence -> q-block tiling + bf16 attn writeback. ---
    S2 = 256
    x2 = jax.random.normal(kx2, (B, S2, d_model), jnp.float32)
    out2, attn2 = attention_head(x2, wq, bq, wk, bk, wv, bv,
                                 attn_dtype=jnp.bfloat16)    # q_block -> 128
    jax.block_until_ready((out2, attn2))
    out2_ref, attn2_ref = _reference(x2, wq, bq, wk, bk, wv, bv)
    assert jnp.allclose(out2, out2_ref, atol=2e-2, rtol=2e-2)
    assert jnp.allclose(attn2.astype(jnp.float32), attn2_ref,
                        atol=2e-2, rtol=2e-2)

    print("KERNEL_OK")
</pallas_src>

<mosaic_0001>
module attributes {stable_mosaic.version = 11 : i64} {
  func.func @_qkv_projection_kernel(%arg0: i32, %arg1: memref<1x8x32xf32, #tpu.memory_space<vmem>>, %arg2: memref<3x32x16xf32, #tpu.memory_space<vmem>>, %arg3: memref<3x1x16xf32, #tpu.memory_space<vmem>>, %arg4: memref<1x8x16xf32, #tpu.memory_space<vmem>>, %arg5: memref<1x16x8xf32, #tpu.memory_space<vmem>>, %arg6: memref<1x8x16xf32, #tpu.memory_space<vmem>>) attributes {dimension_semantics = [#tpu.dimension_semantics<parallel>], iteration_bounds = array<i64: 2>, scalar_prefetch = 0 : i64, scratch_operands = 0 : i64, tpu.core_type = #tpu.core_type<tc>, window_params = [{transform_indices = @transform_0, window_bounds = array<i64: 1, 8, 32>}, {pipeline_mode = #tpu.pipeline_mode<synchronous>, transform_indices = @transform_1, window_bounds = array<i64: 3, 32, 16>}, {pipeline_mode = #tpu.pipeline_mode<synchronous>, transform_indices = @transform_2, window_bounds = array<i64: 3, 1, 16>}, {transform_indices = @transform_3, window_bounds = array<i64: 1, 8, 16>}, {transform_indices = @transform_4, window_bounds = array<i64: 1, 16, 8>}, {transform_indices = @transform_5, window_bounds = array<i64: 1, 8, 16>}]} {
    %c0 = arith.constant 0 : index
    %c0_0 = arith.constant 0 : index
    %c0_1 = arith.constant 0 : index
    %0 = vector.load %arg1[%c0, %c0_0, %c0_1] : memref<1x8x32xf32, #tpu.memory_space<vmem>>, vector<1x8x32xf32>
    %1 = vector.shape_cast %0 : vector<1x8x32xf32> to vector<8x32xf32>
    %c0_2 = arith.constant 0 : index
    %c0_3 = arith.constant 0 : index
    %c0_4 = arith.constant 0 : index
    %2 = vector.load %arg2[%c0_2, %c0_3, %c0_4] : memref<3x32x16xf32, #tpu.memory_space<vmem>>, vector<1x32x16xf32>
    %3 = vector.shape_cast %2 : vector<1x32x16xf32> to vector<32x16xf32>
    %cst = arith.constant dense<0.000000e+00> : vector<8x16xf32>
    %4 = tpu.matmul %1, %3, %cst {dimension_numbers = #tpu.dot_dimension_numbers<[1], [0], [0], [1], [0, 0, 1, 1], [], []>} : vector<8x32xf32>, vector<32x16xf32>, vector<8x16xf32> -> vector<8x16xf32>
    %c0_5 = arith.constant 0 : index
    %c0_6 = arith.constant 0 : index
    %c0_7 = arith.constant 0 : index
    %5 = vector.load %arg3[%c0_5, %c0_6, %c0_7] : memref<3x1x16xf32, #tpu.memory_space<vmem>>, vector<1x1x16xf32>
    %6 = vector.shape_cast %5 : vector<1x1x16xf32> to vector<1x16xf32>
    %7 = vector.broadcast %6 : vector<1x16xf32> to vector<8x16xf32>
    %8 = arith.addf %4, %7 : vector<8x16xf32>
    %c1 = arith.constant 1 : index
    %c0_8 = arith.constant 0 : index
    %c0_9 = arith.constant 0 : index
    %9 = vector.load %arg2[%c1, %c0_8, %c0_9] : memref<3x32x16xf32, #tpu.memory_space<vmem>>, vector<1x32x16xf32>
    %10 = vector.shape_cast %9 : vector<1x32x16xf32> to vector<32x16xf32>
    %cst_10 = arith.constant dense<0.000000e+00> : vector<8x16xf32>
    %11 = tpu.matmul %1, %10, %cst_10 {dimension_numbers = #tpu.dot_dimension_numbers<[1], [0], [0], [1], [0, 0, 1, 1], [], []>} : vector<8x32xf32>, vector<32x16xf32>, vector<8x16xf32> -> vector<8x16xf32>
    %c1_11 = arith.constant 1 : index
    %c0_12 = arith.constant 0 : index
    %c0_13 = arith.constant 0 : index
    %12 = vector.load %arg3[%c1_11, %c0_12, %c0_13] : memref<3x1x16xf32, #tpu.memory_space<vmem>>, vector<1x1x16xf32>
    %13 = vector.shape_cast %12 : vector<1x1x16xf32> to vector<1x16xf32>
    %14 = vector.broadcast %13 : vector<1x16xf32> to vector<8x16xf32>
    %15 = arith.addf %11, %14 : vector<8x16xf32>
    %c2 = arith.constant 2 : index
    %c0_14 = arith.constant 0 : index
    %c0_15 = arith.constant 0 : index
    %16 = vector.load %arg2[%c2, %c0_14, %c0_15] : memref<3x32x16xf32, #tpu.memory_space<vmem>>, vector<1x32x16xf32>
    %17 = vector.shape_cast %16 : vector<1x32x16xf32> to vector<32x16xf32>
    %cst_16 = arith.constant dense<0.000000e+00> : vector<8x16xf32>
    %18 = tpu.matmul %1, %17, %cst_16 {dimension_numbers = #tpu.dot_dimension_numbers<[1], [0], [0], [1], [0, 0, 1, 1], [], []>} : vector<8x32xf32>, vector<32x16xf32>, vector<8x16xf32> -> vector<8x16xf32>
    %c2_17 = arith.constant 2 : index
    %c0_18 = arith.constant 0 : index
    %c0_19 = arith.constant 0 : index
    %19 = vector.load %arg3[%c2_17, %c0_18, %c0_19] : memref<3x1x16xf32, #tpu.memory_space<vmem>>, vector<1x1x16xf32>
    %20 = vector.shape_cast %19 : vector<1x1x16xf32> to vector<1x16xf32>
    %21 = vector.broadcast %20 : vector<1x16xf32> to vector<8x16xf32>
    %22 = arith.addf %18, %21 : vector<8x16xf32>
    %cst_20 = arith.constant 2.500000e-01 : f32
    %23 = vector.broadcast %cst_20 : f32 to vector<8x16xf32>
    %24 = arith.mulf %8, %23 : vector<8x16xf32>
    %c0_21 = arith.constant 0 : index
    %c0_22 = arith.constant 0 : index
    %c0_23 = arith.constant 0 : index
    %25 = vector.load %arg4[%c0_21, %c0_22, %c0_23] : memref<1x8x16xf32, #tpu.memory_space<vmem>>, vector<1x8x16xf32>
    %26 = vector.shape_cast %25 : vector<1x8x16xf32> to vector<8x16xf32>
    %27 = vector.shape_cast %24 : vector<8x16xf32> to vector<1x8x16xf32>
    tpu.vector_store %arg4[%c0_21, %c0_22, %c0_23], %27 {strides = array<i32>} : memref<1x8x16xf32, #tpu.memory_space<vmem>>, vector<1x8x16xf32>,
    %28 = tpu.transpose %15, [1, 0] : vector<8x16xf32> -> vector<16x8xf32>
    %c0_24 = arith.constant 0 : index
    %c0_25 = arith.constant 0 : index
    %c0_26 = arith.constant 0 : index
    %29 = vector.load %arg5[%c0_24, %c0_25, %c0_26] : memref<1x16x8xf32, #tpu.memory_space<vmem>>, vector<1x16x8xf32>
    %30 = vector.shape_cast %29 : vector<1x16x8xf32> to vector<16x8xf32>
    %31 = vector.shape_cast %28 : vector<16x8xf32> to vector<1x16x8xf32>
    tpu.vector_store %arg5[%c0_24, %c0_25, %c0_26], %31 {strides = array<i32>} : memref<1x16x8xf32, #tpu.memory_space<vmem>>, vector<1x16x8xf32>,
    %c0_27 = arith.constant 0 : index
    %c0_28 = arith.constant 0 : index
    %c0_29 = arith.constant 0 : index
    %32 = vector.load %arg6[%c0_27, %c0_28, %c0_29] : memref<1x8x16xf32, #tpu.memory_space<vmem>>, vector<1x8x16xf32>
    %33 = vector.shape_cast %32 : vector<1x8x16xf32> to vector<8x16xf32>
    %34 = vector.shape_cast %22 : vector<8x16xf32> to vector<1x8x16xf32>
    tpu.vector_store %arg6[%c0_27, %c0_28, %c0_29], %34 {strides = array<i32>} : memref<1x8x16xf32, #tpu.memory_space<vmem>>, vector<1x8x16xf32>,
    return
  }
  func.func @transform_0(%arg0: i32) -> (i32, i32, i32) {
    %c0_i32 = arith.constant 0 : i32
    %c0_i32_0 = arith.constant 0 : i32
    %c0_i32_1 = arith.constant 0 : i32
    return %arg0, %c0_i32, %c0_i32_0 : i32, i32, i32
  }
  func.func @transform_1(%arg0: i32) -> (i32, i32, i32) {
    %c0_i32 = arith.constant 0 : i32
    %c0_i32_0 = arith.constant 0 : i32
    %c0_i32_1 = arith.constant 0 : i32
    %c0_i32_2 = arith.constant 0 : i32
    return %c0_i32, %c0_i32_0, %c0_i32_1 : i32, i32, i32
  }
  func.func @transform_2(%arg0: i32) -> (i32, i32, i32) {
    %c0_i32 = arith.constant 0 : i32
    %c0_i32_0 = arith.constant 0 : i32
    %c0_i32_1 = arith.constant 0 : i32
    %c0_i32_2 = arith.constant 0 : i32
    return %c0_i32, %c0_i32_0, %c0_i32_1 : i32, i32, i32
  }
  func.func @transform_3(%arg0: i32) -> (i32, i32, i32) {
    %c0_i32 = arith.constant 0 : i32
    %c0_i32_0 = arith.constant 0 : i32
    %c0_i32_1 = arith.constant 0 : i32
    return %arg0, %c0_i32, %c0_i32_0 : i32, i32, i32
  }
  func.func @transform_4(%arg0: i32) -> (i32, i32, i32) {
    %c0_i32 = arith.constant 0 : i32
    %c0_i32_0 = arith.constant 0 : i32
    %c0_i32_1 = arith.constant 0 : i32
    return %arg0, %c0_i32, %c0_i32_0 : i32, i32, i32
  }
  func.func @transform_5(%arg0: i32) -> (i32, i32, i32) {
    %c0_i32 = arith.constant 0 : i32
    %c0_i32_0 = arith.constant 0 : i32
    %c0_i32_1 = arith.constant 0 : i32
    return %arg0, %c0_i32, %c0_i32_0 : i32, i32, i32
  }
}

</mosaic_0001>

<bundles_post_ra>
// kernel: tpu_custom_call.1
= control target key start
LH: loop header
LB: loop body
LE: loop exit
PB: predicated region body
PF: predicated region fallthrough
CT: control target
= control target key end

     0   :  { %11 = vsyncpa [#allocation3], 0  ;;  %s905_s0 = inlined_call_operand.vmem [shape: f32[2,8,32], index: 0, kind: input, shape index: {}]   ;;  %s906_s1 = inlined_call_operand.vmem [shape: f32[3,32,16], index: 1, kind: input, shape index: {}]   ;;  %s907_s2 = inlined_call_operand.vmem [shape: f32[3,1,16], index: 2, kind: input, shape index: {}]   ;;  %s908_s3 = inlined_call_operand.hbm [shape: f32[2,8,16], index: 3, kind: output, shape index: {0}]   ;;  %s909_s4 = inlined_call_operand.vmem [shape: f32[2,16,8], index: 4, kind: output, shape index: {1}]   ;;  %s910_s5 = inlined_call_operand.hbm [shape: f32[2,8,16], index: 5, kind: output, shape index: {2}]  }
   0x1   :  { %13 = vsyncpa [#allocation3 + $0x1], 0 }
   0x2   :  { %14 = vsyncpa [#allocation5], 0 }
   0x3   :  { %16 = vsyncpa [#allocation5 + $0x1], 0  ;;  %s738_s18 = smov 0   ;;  %s740_s19 = smov 0  }
   0x4   :  { %s742_s20 = smov 0   ;;  %s744_s21 = smov 0  }
   0x5 LB: > { %s759_s22 = sadd.s32 4294967295, %s706_s21   ;;  %s535_s23 = sadd.s32 4294967294, %s706_s21   ;;  %s706_s21 = sphi %s744_s21, %s916_s21   ;;  %s702_s20 = sphi %s742_s20, %s915_s20   ;;  %s698_s19 = sphi %s740_s19, %s914_s19   ;;  %s694_s18 = sphi %s738_s18, %s913_s18  }
   0x6   : > { %s763_s24 = sadd.s32 1, %s706_s21   ;;  %s97_s25 = sadd.s32 1, %s702_s20 }
   0x7   : > { %s94_s26 = ssub.s32 %s706_s21, %s763_s24  ;;  %p107_p0 = scmp.ne.s32.totalorder %s702_s20, %s698_s19 }
   0x8   : > { %p95_p1 = scmp.eq.s32.totalorder %s94_s26, 0  ;;  %p108_p2 = scmp.eq.s32.totalorder %s759_s22, 1 }
   0x9   : > { %p113_p3 = scmp.ne.s32.totalorder %s698_s19, %s694_s18  ;;  %p114_p4 = scmp.eq.s32.totalorder %s535_s23, 1 }
   0xa   : > { %s774_s27 = scalar_select %p95_p1, %s702_s20, %s97_s25  }
   0xb   : > { %p776_p5 = por %p108_p2, %p107_p0  ;;  %p780_p6 = por %p114_p4, %p113_p3 }
   0xc   : > { %p538_p7 = scmp.ge.s32.totalorder %s706_s21, 1  ;;  %p197_p8 = scmp.lt.s32.totalorder %s706_s21, 3 }
   0xe   : > { %p198_p9 = pnand %p538_p7, %p197_p8 }
   0xf   : > { %p234_p10 = scmp.lt.s32.totalorder (!%p198_p9), %s759_s22, 1  ;;  %s837_s30 = sand.u32 (!%p198_p9), 1, %s698_s19  }
  0x10   : > { %201 = sbr.rel (%p198_p9) target bundleno = 331 (0x14b), region = 32  ;;  %s539_s6 = sshll.u32 (!%p198_p9), %s837_s30, 3 }
  0x11   : > { %s559_s7 = sshll.u32 (!%p198_p9), %s759_s22, 3  ;;  %s233_s8 = scalar_lea.vmem (!%p198_p9), [#allocation4], %s539_s6 }
  0x12   : > { %s396_s10 = scalar_lea.hbm (!%p198_p9), %s908_s3, %s559_s7  ;;  %s413_s23 = scalar_lea.hbm (!%p198_p9), %s910_s5, %s559_s7 }
  0x13   : > { %s400_s26 = sshll.u32 (!%p198_p9), %s396_s10, 4  ;;  %s415_s9 = sshll.u32 (!%p198_p9), %s233_s8, 4  ;;  %s401_s26 = int_to_ptr.hbm [resolvable:$true] %s400_s26  ;;  %s853_s9 = int_to_ptr.vmem [resolvable:$true] %s415_s9 }
  0x14   : > { %s417_s12 = sshll.u32 (!%p198_p9), %s413_s23, 4  ;;  %s376_s7 = scalar_lea.sflag (!%p198_p9), [#allocation3], %s837_s30  ;;  %s855_s12 = int_to_ptr.hbm [resolvable:$true] %s417_s12 }
  0x15   : > { %v548_v0 = vld [vmem:[%s906_s1 + $0x38] sm:$0xff]  ;;  %v547_v1 = vld [vmem:[%s906_s1 + $0x30] sm:$0xff]  ;;  %v546_v2 = vld [vmem:[%s906_s1 + $0x28] sm:$0xff]  ;;  %s797_s11 = scalar_select %p234_p10, %s759_s22, 1  ;;  %vm252_vm0 = vcmask 261120   ;;  %vm337_vm1 = vcmask 130048  }
  0x16   : > { %298 = vmatpush.msra.mxu1 %v548_v0  ;;  %v545_v3 = vld [vmem:[%s906_s1 + $0x20] sm:$0xff]  ;;  %v554_v5 = vld [vmem:[%s906_s1 + $0x58] sm:$0xff]  ;;  %v553_v6 = vld [vmem:[%s906_s1 + $0x50] sm:$0xff]  ;;  %s219_s22 = scalar_lea.vmem [#allocation2], %s539_s6  ;;  %s626_s13 = sshra.s32 %s401_s26, 4  ;;  %s627_s13 = int_to_ptr.hbm [resolvable:$true] %s626_s13 }
  0x17   : > { %s541_s14 = sshll.u32 %s797_s11, 3  ;;  %v247_v7 = vld [vmem:[%s906_s1 + $0x18] sm:$0xff]  ;;  %328 = vmatpush.msra.mxu2 %v554_v5  ;;  %v246_v8 = vld [vmem:[%s906_s1 + $0x10] sm:$0xff]  ;;  %v552_v9 = vld [vmem:[%s906_s1 + $0x48] sm:$0xff]  ;;  %s398_s25 = sshll.u32 %s219_s22, 4  ;;  %s399_s25 = int_to_ptr.vmem [resolvable:$true] %s398_s25 }
  0x18   : > { %299 = vmatpush.msra.mxu1 %v547_v1  ;;  %s237_s17 = scalar_lea.vmem %s905_s0, %s541_s14  ;;  %268 = vmatpush.msra.mxu0 %v247_v7  ;;  %v245_v10 = vld [vmem:[%s906_s1 + $0x8] sm:$0xff]  ;;  %v551_v11 = vld [vmem:[%s906_s1 + $0x40] sm:$0xff]  ;;  %s628_s14 = scalar_lea.hbm %s627_s13, 8 }
  0x19   : > { %v243_v4 = vld [vmem:[%s237_s17] sm:$0xff]  ;;  %329 = vmatpush.msra.mxu2 %v553_v6  ;;  %p629_p11 = scmp.ne.s32.totalorder %s627_s13, %s628_s14  ;;  %s632_s15 = scalar_lea.hbm %s908_s3, 16 }
  0x1a   : > { %300 = vmatpush.msra.mxu1 %v546_v2  ;;  %269 = vmatpush.msra.mxu0 %v246_v8  ;;  %v244_v12 = vld [vmem:[%s906_s1] sm:$0xff]  ;;  %p633_p0 = scmp.lt.s32.totalorder %s627_s13, %s908_s3  ;;  %p634_p1 = scmp.lt.s32.totalorder %s632_s15, %s628_s14 }
  0x1b   : > { %330 = vmatpush.msra.mxu2 %v552_v9  ;;  %v609_v13 = vld [vmem:[%s907_s2 + $0x1] ss:$0 sm:$0xff]  ;;  %v610_v16 = vld [vmem:[%s907_s2] ss:$0 sm:$0xff]  ;;  %v611_v18 = vld [vmem:[%s907_s2 + $0x2] ss:$0 sm:$0xff]  ;;  %p630_p12 = pnand %p629_p11, %p776_p5 }
  0x1c   : > { %301 = vmatpush.msra.mxu1 %v545_v3  ;;  %270 = vmatpush.msra.mxu0 %v245_v10  ;;  %p635_p2 = por %p634_p1, %p633_p0 }
  0x1d   : > { %550 = vmatmul.msk.f32.vlgmr.msra.gmra.mxu1 %vm252_vm0, %v243_v4  ;;  %331 = vmatpush.msra.mxu2 %v551_v11  ;;  %p631_p13 = pneg %p630_p12 }
  0x1e   : > { %271 = vmatpush.msra.mxu0 %v244_v12  ;;  %556 = vmatmul.msk.f32.vlgmr.msra.gmra.mxu2 %vm252_vm0, %v243_v4 }
  0x1f   : > { %544 = vmatmul.msk.f32.vlgmr.msra.gmra.mxu0 %vm252_vm0, %v243_v4  ;;  %p636_p3 = pnand %p635_p2, %p631_p13 }
  0x9a   : > { %v303_v14 = vpop.f32.mrf.mxu1 }
  0x9b   : > { %v304_v15 = vadd.f32 %v609_v13, %v303_v14 }
  0x9c   : > { %v273_v17 = vpop.f32.mrf.mxu0 }
  0x9d   : > { %339 = vxpose.xlu0.b32.start.end [1/1] (short) (narrow) %v304_v15, 16  ;;  %v274_v20 = vadd.f32 %v610_v16, %v273_v17 }
  0x9f   : > { %v336_v21 = vmul.f32 0.25, %v274_v20 }
  0xa1   : > { %v333_v19 = vpop.f32.mrf.mxu2  ;;  %338 = vst.msk [vmem:[%s219_s22] sm:$0xff] %vm337_vm1, %v336_v21 }
  0xa2   : > { %v334_v22 = vadd.f32 %v611_v18, %v333_v19 }
  0xa3   : > { %639 = shalt.err (!%p636_p3)
}
  0xa4   : > { %564 = dma.vmem_to_hbm [thread:$0]  (%p776_p5), %s399_s25, 128, %s401_s26, %s376_s7   ;;  %374 = vst.msk [vmem:[%s233_s8] sm:$0xff] %vm337_vm1, %v334_v22 }
  0xa5   : > { %s386_s23 = scalar_lea.sflag [#allocation5], %s837_s30  ;;  %s654_s22 = sshra.s32 %s855_s12, 4  ;;  %s655_s22 = int_to_ptr.hbm [resolvable:$true] %s654_s22 }
  0xa6   : > { %s656_s6 = scalar_lea.hbm %s655_s22, 8  ;;  %s660_s10 = scalar_lea.hbm %s910_s5, 16 }
  0xa7   : > { %p657_p4 = scmp.ne.s32.totalorder %s655_s22, %s656_s6  ;;  %p661_p9 = scmp.lt.s32.totalorder %s655_s22, %s910_s5 }
  0xa8   : > { %p662_p10 = scmp.lt.s32.totalorder %s660_s10, %s656_s6 }
  0xa9   : > { %p658_p7 = pnand %p657_p4, %p776_p5 }
  0xaa   : > { %p663_p11 = por %p662_p10, %p661_p9 }
  0xab   : > { %p659_p8 = pneg %p658_p7 }
  0xad   : > { %p664_p12 = pnand %p663_p11, %p659_p8 }
  0xaf   : > { %667 = shalt.err (!%p664_p12)
}
  0xb0   : > { %565 = dma.vmem_to_hbm [thread:$0]  (%p776_p5), %s853_s9, 128, %s855_s12, %s386_s23   ;;  %vm371_vm2 = vcmask 64512  }
  0xb1   : > { %s563_s30 = sshll.u32 %s797_s11, 4 }
  0xb2   : > { %s242_s8 = scalar_lea.vmem %s909_s4, %s563_s30 }
 0x141   : > { %v355_v23 = vpop.trf.xlu0 }
 0x142   : > { %372 = vst.msk [vmem:[%s242_s8] sm:$0xff] %vm371_vm2, %v355_v23 }
 0x149   : > { %v356_v24 = vpop.trf.xlu0 }
 0x14a   : > { %373 = vst.msk [vmem:[%s242_s8 + $0x8] sm:$0xff] %vm371_vm2, %v356_v24 }
 0x14b PF: > { %p575_p13 = scmp.ge.s32.totalorder %s706_s21, 2  ;;  %s429_s28 = sand.u32 1, %s694_s18  }
 0x14c   : > { %s430_s9 = scalar_lea.sflag [#allocation3], %s429_s28 }
 0x14d   : > { %p569_p0 = pnand %p575_p13, %p780_p6 }
 0x14f   : > { %p570_p1 = pneg %p569_p0 }
 0x151   : > { %685 = dma.done.wait (%p570_p1), %s430_s9, 128  }
 0x152   : > { %687 = vsyncadd (%p570_p1), %s430_s9, 4294967168  ;;  %s448_s11 = scalar_lea.sflag [#allocation5], %s429_s28 }
 0x153   : > { %689 = dma.done.wait (%p570_p1), %s448_s11, 128  }
 0x154   : > { %691 = vsyncadd (%p570_p1), %s448_s11, 4294967168  ;;  %p19_p5 = scmp.ge.s32.totalorder %s763_s24, 4   ;;  %s913_s18 = smov %s698_s19 }
 0x155   : > { %s914_s19 = smov %s702_s20  ;;  %s915_s20 = smov %s774_s27 }
 0x156   : > { %s916_s21 = smov %s763_s24  ;;  %21 = sbr.rel (!%p19_p5) target bundleno = 5 (0x5), region = 100 }
 0x15b   :  { %454 = vsyncpa [#allocation3], 1 }
 0x15c   :  { %456 = vsyncpa [#allocation3 + $0x1], 1 }
 0x15d   :  { %457 = vsyncpa [#allocation5], 1 }
 0x15e   :  { %459 = vsyncpa [#allocation5 + $0x1], 1 }

</bundles_post_ra>
